<compile_context>
chip_gen: v5e
topology: v5e:2x2
jax: 0.10.0
libtpu: 0.0.40
codegen_flags: <defaults>
</compile_context>

<pallas_src>
import functools
import math

import jax
import jax.numpy as jnp
from jax.experimental import pallas as pl
from jax.experimental.pallas import tpu as pltpu


def _round_up(x, m):
    return ((x + m - 1) // m) * m


def _pick_tile(dim, candidates):
    for c in candidates:
        if dim % c == 0:
            return c
    return None


def _vmem_limit_bytes(default=48 * 1024 * 1024):
    """Explicit scoped-VMEM budget: ~80% of physical, capped at 100 MiB."""
    try:
        info = pltpu.get_tpu_info()
        cap = getattr(info, "vmem_capacity_bytes", None)
        if cap:
            return int(min(cap * 8 // 10, 100 * 1024 * 1024))
    except Exception:
        pass
    return default


# ------------------------- tiled linear (fc1 / fc2) --------------------------

def _matmul_kernel(x_ref, w_ref, b_ref, o_ref, acc_ref, *, relu):
    @pl.when(pl.program_id(2) == 0)
    def _init():
        acc_ref[...] = jnp.zeros_like(acc_ref)

    acc_ref[...] += jnp.dot(x_ref[...], w_ref[...],
                            preferred_element_type=jnp.float32)

    @pl.when(pl.program_id(2) == pl.num_programs(2) - 1)
    def _finalize():
        y = acc_ref[...] + b_ref[...]
        if relu:
            y = jnp.maximum(y, 0.0)
        o_ref[...] = y.astype(o_ref.dtype)


def linear_tiled(x, w, b, relu=False, out_dtype=jnp.float32):
    """y = x @ w + b.  x:(M,K), w:(K,N) bf16 (pre-padded), b:(1,N) f32.
    bf16 MXU operands, f32 accumulation, K-innermost grid axis."""
    M, K = x.shape
    Kw, N = w.shape
    assert Kw == K
    Mp = _round_up(M, 16)                 # bf16 sublane packing: 16-row multiples
    if Mp != M:                           # fallback only; hot path keeps M aligned
        x = jnp.pad(x, ((0, Mp - M), (0, 0)))
    tm = _pick_tile(Mp, (256, 128, 64, 32, 16))
    tn = _pick_tile(N, (512, 256, 128)) or N
    tk = _pick_tile(K, (512, 256, 128)) or K
    xb = x.astype(jnp.bfloat16)

    out = pl.pallas_call(
        functools.partial(_matmul_kernel, relu=relu),
        out_shape=jax.ShapeDtypeStruct((Mp, N), out_dtype),
        grid=(Mp // tm, N // tn, K // tk),
        in_specs=[
            pl.BlockSpec((tm, tk), lambda i, j, k: (i, k)),
            pl.BlockSpec((tk, tn), lambda i, j, k: (k, j)),
            pl.BlockSpec((1, tn), lambda i, j, k: (0, j)),
        ],
        out_specs=pl.BlockSpec((tm, tn), lambda i, j, k: (i, j)),
        scratch_shapes=[pltpu.VMEM((tm, tn), jnp.float32)],
        compiler_params=pltpu.CompilerParams(
            dimension_semantics=("parallel", "parallel", "arbitrary"),
            vmem_limit_bytes=_vmem_limit_bytes()),
    )(xb, w, b)
    if Mp != M:
        out = out[:M]
    return out


# ------- fused, channel-tiled kernel: t2m -> dwconv3x3 -> m2t -> skip -> GELU -----

def _t2m_dw_m2t_act_kernel(a_t2m_ref, h_ref, a_m2t_ref, wdw_ref, bdw_ref,
                           skip_ref, o_ref, xq_ref, acc_ref, *, W, Pp, E):
    """Per (batch, channel-chunk) program.
       a_t2m: (Pext, Np) bf16  rows = extended/zero-bordered flat pixels,
       h:     (Np, tc)   bf16  fc1 output tokens (channel chunk),
       a_m2t: (Np, Pp)   bf16  cols = zero-padded (H+2)*(W+2) flat pixels,
       wdw:   (16, tc), bdw/skip: (1, tc) f32,  o: (Np, tc) bf16,
       xq_ref: (Pext, tc) f32 scratch, acc_ref: (Pp, tc) f32 scratch."""
    h = h_ref[...]                                                    # (Np, tc) bf16

    # token2map: normalized scatter realized as one MXU matmul onto the extended
    # flat grid (border / extension rows of A are zero -> zero halo for free).
    xq_ref[...] = jnp.dot(a_t2m_ref[...], h,
                          preferred_element_type=jnp.float32)         # (Pext, tc)

    # depthwise 3x3: 9 shifted *ref-slice* reads of the extended map (VPU),
    # accumulated into a VMEM scratch (no value-slice relayout copies).
    wdw = wdw_ref[...]                                                # (16, tc)
    first = True
    for kh in range(3):
        for kw in range(3):
            off = (kh - 1) * (W + 2) + (kw - 1)
            k = kh * 3 + kw
            tap = xq_ref[pl.ds(E + off, Pp), :] * wdw[k:k + 1, :]
            if first:
                acc_ref[...] = tap + bdw_ref[...]
                first = False
            else:
                acc_ref[...] += tap

    # map2token: normalized gather as one MXU matmul (border / pad columns are zero).
    yt = jnp.dot(a_m2t_ref[...], acc_ref[...].astype(jnp.bfloat16),
                 preferred_element_type=jnp.float32)                  # (Np, tc)

    # + dwconv_skip (per-channel 1x1 Conv1d) and exact (erf) GELU.
    z = yt + h.astype(jnp.float32) * skip_ref[...]
    z = 0.5 * z * (1.0 + jax.lax.erf(z * (1.0 / math.sqrt(2.0))))
    o_ref[...] = z.astype(o_ref.dtype)


def fused_t2m_dwconv_m2t_act(a_t2m, h3, a_m2t, wdw, bdw, skip, *, W, Pp, E):
    B, Pext, Np = a_t2m.shape
    Cp = h3.shape[-1]
    tc = _pick_tile(Cp, (512, 256, 128)) or Cp
    nC = Cp // tc
    # TODO(synk): for very large Pext*Np keep A_t2m/A_m2t in HBM (pl.ANY) and stream
    #             K-chunks with pltpu.emit_pipeline instead of whole-block auto-DMA.
    return pl.pallas_call(
        functools.partial(_t2m_dw_m2t_act_kernel, W=W, Pp=Pp, E=E),
        out_shape=jax.ShapeDtypeStruct((B, Np, Cp), jnp.bfloat16),
        grid=(B, nC),
        in_specs=[
            pl.BlockSpec((None, Pext, Np), lambda b, c: (b, 0, 0)),   # const over c
            pl.BlockSpec((None, Np, tc), lambda b, c: (b, 0, c)),
            pl.BlockSpec((None, Np, Pp), lambda b, c: (b, 0, 0)),     # const over c
            pl.BlockSpec((16, tc), lambda b, c: (0, c)),
            pl.BlockSpec((1, tc), lambda b, c: (0, c)),
            pl.BlockSpec((1, tc), lambda b, c: (0, c)),
        ],
        out_specs=pl.BlockSpec((None, Np, tc), lambda b, c: (b, 0, c)),
        scratch_shapes=[pltpu.VMEM((Pext, tc), jnp.float32),
                        pltpu.VMEM((Pp, tc), jnp.float32)],
        compiler_params=pltpu.CompilerParams(
            dimension_semantics=("parallel", "parallel"),
            vmem_limit_bytes=_vmem_limit_bytes()),
    )(a_t2m, h3, a_m2t, wdw, bdw, skip)


# ------------------------------ JAX glue --------------------------------------

def _pixel_idx(loc_orig, H, W):
    """Nearest-pixel assignment used by token2map_agg_mat / map2token_agg_fast_nearest."""
    loc = jnp.clip(loc_orig, -1.0, 1.0)
    loc = (loc + 1.0) / 2.0
    px = jnp.clip(jnp.round(loc[..., 0] * W - 0.5).astype(jnp.int32), 0, W - 1)
    py = jnp.clip(jnp.round(loc[..., 1] * H - 0.5).astype(jnp.int32), 0, H - 1)
    return py, px


def build_agg_mats(loc_orig, idx_agg, agg_weight, H, W, Np):
    """Dense normalized assignment matrices on the padded / extended flat pixel grid,
    built via scatter-add (no one-hot intermediates).  P and N are zero-padded to
    lane/sublane-dense sizes; the zero rows/cols contribute nothing to the matmuls.
    # TODO(synk): replace with a sparse CSR / segment-sum kernel at production N0."""
    B, N0, _ = loc_orig.shape
    py, px = _pixel_idx(loc_orig, H, W)
    P = (H + 2) * (W + 2)              # zero-bordered pixel grid, flattened
    Pp = _round_up(P, 128)             # lane-dense K dim for the m2t contraction
    E = W + 3                          # extension so every conv tap slice is in-range
    Pext = _round_up(2 * E + Pp, 16)
    idx_pad = (py + 1) * (W + 2) + (px + 1)                             # (B, N0)
    bb = jnp.broadcast_to(jnp.arange(B)[:, None], (B, N0))

    # token2map: unit weight per original point, per-pixel normalization (+1e-6).
    A_t2m = jnp.zeros((B, Pext, Np), jnp.float32)
    A_t2m = A_t2m.at[bb, idx_pad + E, idx_agg].add(1.0)
    A_t2m = A_t2m / (A_t2m.sum(axis=2, keepdims=True) + 1e-6)

    # map2token: agg_weight per original point, per-token normalization (+1e-6).
    wgt = agg_weight.reshape(B, N0).astype(jnp.float32)
    A_m2t = jnp.zeros((B, Np, Pp), jnp.float32)
    A_m2t = A_m2t.at[bb, idx_agg, idx_pad].add(wgt)
    A_m2t = A_m2t / (A_m2t.sum(axis=2, keepdims=True) + 1e-6)
    # bf16 for MXU operands (normalization done in f32).
    return A_t2m.astype(jnp.bfloat16), A_m2t.astype(jnp.bfloat16), Pp, Pext, E


def prepare_params(params):
    """One-time weight prep outside the hot path: transpose, lane-pad, cast."""
    hid, _ = params['fc1_w'].shape
    Cout = params['fc2_w'].shape[0]
    Cp = _round_up(hid, 128)
    Coutp = _round_up(Cout, 128)
    w1 = jnp.pad(params['fc1_w'].T, ((0, 0), (0, Cp - hid))).astype(jnp.bfloat16)
    b1 = jnp.pad(params['fc1_b'], (0, Cp - hid)).astype(jnp.float32).reshape(1, Cp)
    wdw = params['dw_w'][:, 0, :, :].reshape(hid, 9).T                  # (9, hid)
    wdw = jnp.pad(wdw, ((0, 7), (0, Cp - hid))).astype(jnp.float32)     # (16, Cp)
    bdw = jnp.pad(params['dw_b'], (0, Cp - hid)).astype(jnp.float32).reshape(1, Cp)
    skip = jnp.pad(params['skip_w'][:, 0, 0],
                   (0, Cp - hid)).astype(jnp.float32).reshape(1, Cp)
    w2 = jnp.pad(params['fc2_w'].T,
                 ((0, Cp - hid), (0, Coutp - Cout))).astype(jnp.bfloat16)
    b2 = jnp.pad(params['fc2_b'], (0, Coutp - Cout)).astype(jnp.float32).reshape(1, Coutp)
    return dict(w1=w1, b1=b1, wdw=wdw, bdw=bdw, skip=skip, w2=w2, b2=b2,
                Cp=Cp, Coutp=Coutp, Cout=Cout, hid=hid)


def my_mlp_forward(x, loc_orig, idx_agg, agg_weight, H, W, prep, linear_flag=False):
    """MyMlp.forward. x: (B, N, Cin) float32. drop=0.0 -> dropout is identity."""
    B, N, Cin = x.shape
    Cp, Coutp, Cout = prep['Cp'], prep['Coutp'], prep['Cout']
    Np = _round_up(N, 128)      # sublane/lane-dense token axis everywhere downstream
    if Np != N:
        x = jnp.pad(x, ((0, 0), (0, Np - N), (0, 0)))   # pad the *small* fc1 input once

    # fc1 (+ optional ReLU when linear=True): bf16 output (largest activation).
    h = linear_tiled(x.reshape(B * Np, Cin), prep['w1'], prep['b1'],
                     relu=linear_flag, out_dtype=jnp.bfloat16)        # (B*Np, Cp)

    # token2map -> dwconv3x3 -> map2token -> +skip -> GELU, fused & channel-tiled.
    A_t2m, A_m2t, Pp, Pext, E = build_agg_mats(loc_orig, idx_agg, agg_weight, H, W, Np)
    z = fused_t2m_dwconv_m2t_act(A_t2m, h.reshape(B, Np, Cp), A_m2t,
                                 prep['wdw'], prep['bdw'], prep['skip'],
                                 W=W, Pp=Pp, E=E)                     # (B,Np,Cp) bf16

    # fc2 (padded token rows carry no information; sliced off at the end).
    out = linear_tiled(z.reshape(B * Np, Cp), prep['w2'], prep['b2'],
                       out_dtype=jnp.float32)                         # (B*Np, Coutp)
    return out.reshape(B, Np, Coutp)[:, :N, :Cout]


# --------------------------- pure-JAX reference --------------------------------

def build_agg_mats_ref(loc_orig, idx_agg, agg_weight, H, W, N):
    B, N0, _ = loc_orig.shape
    py, px = _pixel_idx(loc_orig, H, W)
    idx_hw = py * W + px
    oh_hw = jax.nn.one_hot(idx_hw, H * W, dtype=jnp.float32)
    oh_tok = jax.nn.one_hot(idx_agg, N, dtype=jnp.float32)
    A_t2m = jnp.einsum('bpq,bpn->bqn', oh_hw, oh_tok)
    A_t2m = A_t2m / (A_t2m.sum(axis=2, keepdims=True) + 1e-6)
    wgt = agg_weight.reshape(B, N0).astype(jnp.float32)
    A_m2t = jnp.einsum('bpn,bpq,bp->bnq', oh_tok, oh_hw, wgt)
    A_m2t = A_m2t / (A_m2t.sum(axis=2, keepdims=True) + 1e-6)
    return A_t2m, A_m2t


def ref_forward(x, loc_orig, idx_agg, agg_weight, H, W, params):
    hp = jax.lax.Precision.HIGHEST
    B, N, Cin = x.shape
    hid = params['fc1_w'].shape[0]
    h = jnp.einsum('bnc,hc->bnh', x, params['fc1_w'], precision=hp) + params['fc1_b']
    A_t2m, A_m2t = build_agg_mats_ref(loc_orig, idx_agg, agg_weight, H, W, N)
    xm = jnp.einsum('bqn,bnc->bqc', A_t2m, h, precision=hp).reshape(B, H, W, hid)
    w_dw = jnp.transpose(params['dw_w'], (2, 3, 1, 0))               # (3, 3, 1, hid)
    ym = jax.lax.conv_general_dilated(
        xm, w_dw, window_strides=(1, 1), padding='SAME',
        dimension_numbers=('NHWC', 'HWIO', 'NHWC'),
        feature_group_count=hid, precision=hp) + params['dw_b']
    yt = jnp.einsum('bnq,bqc->bnc', A_m2t, ym.reshape(B, H * W, hid), precision=hp)
    z = yt + h * params['skip_w'][:, 0, 0]
    z = 0.5 * z * (1.0 + jax.lax.erf(z / jnp.sqrt(2.0)))
    out = jnp.einsum('bnh,oh->bno', z, params['fc2_w'], precision=hp) + params['fc2_b']
    return out


# ----------------------------------- main ---------------------------------------

if __name__ == "__main__":
    B, N, H, W = 2, 16, 8, 8
    N0 = H * W
    Cin, hid, Cout = 16, 32, 16

    key = jax.random.PRNGKey(0)
    ks = jax.random.split(key, 10)

    # Deterministic synthetic parameters (shapes follow the module __init__).
    params = {
        # nn.Linear(in, hidden): weight (hidden, in), trunc_normal std=0.02; bias 0
        'fc1_w': 0.02 * jax.random.truncated_normal(ks[0], -2.0, 2.0, (hid, Cin), jnp.float32),
        'fc1_b': jnp.zeros((hid,), jnp.float32),
        # nn.Conv2d(hid, hid, 3, groups=hid): weight (hid, 1, 3, 3), normal(0, sqrt(2/9)); bias 0
        'dw_w': math.sqrt(2.0 / 9.0) * jax.random.normal(ks[1], (hid, 1, 3, 3), jnp.float32),
        'dw_b': jnp.zeros((hid,), jnp.float32),
        # nn.Conv1d(hid, hid, 1, groups=hid, bias=False): weight (hid, 1, 1)
        'skip_w': jax.random.uniform(ks[2], (hid, 1, 1), jnp.float32, -1.0, 1.0),
        # nn.Linear(hidden, out)
        'fc2_w': 0.02 * jax.random.truncated_normal(ks[3], -2.0, 2.0, (Cout, hid), jnp.float32),
        'fc2_b': jnp.zeros((Cout,), jnp.float32),
    }

    x = jax.random.normal(ks[4], (B, N, Cin), jnp.float32)
    loc_orig = jax.random.uniform(ks[5], (B, N0, 2), jnp.float32, -1.0, 1.0)
    idx_agg = jax.random.randint(ks[6], (B, N0), 0, N)
    agg_weight = jax.random.uniform(ks[7], (B, N0, 1), jnp.float32, 0.1, 1.0)

    prep = prepare_params(params)   # one-time weight padding / casting (not hot path)
    out = my_mlp_forward(x, loc_orig, idx_agg, agg_weight, H, W, prep)
    out = jax.block_until_ready(out)

    ref = ref_forward(x, loc_orig, idx_agg, agg_weight, H, W, params)
    err = float(jnp.max(jnp.abs(out - ref)))
    assert err < 1e-2, f"max abs err {err}"

    print("KERNEL_OK")
</pallas_src>

<mosaic_0001>
module attributes {stable_mosaic.version = 11 : i64} {
  func.func @_matmul_kernel(%arg0: i32, %arg1: i32, %arg2: i32, %arg3: memref<256x16xbf16, #tpu.memory_space<vmem>>, %arg4: memref<16x128xbf16, #tpu.memory_space<vmem>>, %arg5: memref<1x128xf32, #tpu.memory_space<vmem>>, %arg6: memref<256x128xbf16, #tpu.memory_space<vmem>>, %arg7: memref<256x128xf32, #tpu.memory_space<vmem>>) attributes {dimension_semantics = [#tpu.dimension_semantics<parallel>, #tpu.dimension_semantics<parallel>, #tpu.dimension_semantics<arbitrary>], iteration_bounds = array<i64: 1, 1, 1>, scalar_prefetch = 0 : i64, scratch_operands = 1 : i64, tpu.core_type = #tpu.core_type<tc>, window_params = [{transform_indices = @transform_0, window_bounds = array<i64: 256, 16>}, {transform_indices = @transform_1, window_bounds = array<i64: 16, 128>}, {transform_indices = @transform_2, window_bounds = array<i64: 1, 128>}, {transform_indices = @transform_3, window_bounds = array<i64: 256, 128>}]} {
    %c0_i32 = arith.constant 0 : i32
    %0 = arith.cmpi eq, %arg2, %c0_i32 : i32
    %1 = arith.extui %0 : i1 to i32
    %c0_i32_0 = arith.constant 0 : i32
    %2 = arith.cmpi ne, %1, %c0_i32_0 : i32
    scf.if %2 {
      %cst_10 = arith.constant 0.000000e+00 : f32
      %12 = vector.broadcast %cst_10 : f32 to vector<256x128xf32>
      %c0_11 = arith.constant 0 : index
      %c0_12 = arith.constant 0 : index
      %13 = vector.load %arg7[%c0_11, %c0_12] : memref<256x128xf32, #tpu.memory_space<vmem>>, vector<256x128xf32>
      tpu.vector_store %arg7[%c0_11, %c0_12], %12 {strides = array<i32>} : memref<256x128xf32, #tpu.memory_space<vmem>>, vector<256x128xf32>,
    } else {
    }
    %c0 = arith.constant 0 : index
    %c0_1 = arith.constant 0 : index
    %3 = vector.load %arg7[%c0, %c0_1] : memref<256x128xf32, #tpu.memory_space<vmem>>, vector<256x128xf32>
    %c0_2 = arith.constant 0 : index
    %c0_3 = arith.constant 0 : index
    %4 = vector.load %arg3[%c0_2, %c0_3] : memref<256x16xbf16, #tpu.memory_space<vmem>>, vector<256x16xbf16>
    %c0_4 = arith.constant 0 : index
    %c0_5 = arith.constant 0 : index
    %5 = vector.load %arg4[%c0_4, %c0_5] : memref<16x128xbf16, #tpu.memory_space<vmem>>, vector<16x128xbf16>
    %cst = arith.constant dense<0.000000e+00> : vector<256x128xf32>
    %6 = tpu.matmul %4, %5, %cst {dimension_numbers = #tpu.dot_dimension_numbers<[1], [0], [0], [1], [0, 0, 1, 1], [], []>} : vector<256x16xbf16>, vector<16x128xbf16>, vector<256x128xf32> -> vector<256x128xf32>
    %7 = arith.addf %3, %6 : vector<256x128xf32>
    %c0_6 = arith.constant 0 : index
    %c0_7 = arith.constant 0 : index
    %8 = vector.load %arg7[%c0_6, %c0_7] : memref<256x128xf32, #tpu.memory_space<vmem>>, vector<256x128xf32>
    tpu.vector_store %arg7[%c0_6, %c0_7], %7 {strides = array<i32>} : memref<256x128xf32, #tpu.memory_space<vmem>>, vector<256x128xf32>,
    %c0_i32_8 = arith.constant 0 : i32
    %9 = arith.cmpi eq, %arg2, %c0_i32_8 : i32
    %10 = arith.extui %9 : i1 to i32
    %c0_i32_9 = arith.constant 0 : i32
    %11 = arith.cmpi ne, %10, %c0_i32_9 : i32
    scf.if %11 {
      %c0_10 = arith.constant 0 : index
      %c0_11 = arith.constant 0 : index
      %12 = vector.load %arg7[%c0_10, %c0_11] : memref<256x128xf32, #tpu.memory_space<vmem>>, vector<256x128xf32>
      %c0_12 = arith.constant 0 : index
      %c0_13 = arith.constant 0 : index
      %13 = vector.load %arg5[%c0_12, %c0_13] : memref<1x128xf32, #tpu.memory_space<vmem>>, vector<1x128xf32>
      %14 = vector.broadcast %13 : vector<1x128xf32> to vector<256x128xf32>
      %15 = arith.addf %12, %14 : vector<256x128xf32>
      %16 = arith.truncf %15 : vector<256x128xf32> to vector<256x128xbf16>
      %c0_14 = arith.constant 0 : index
      %c0_15 = arith.constant 0 : index
      %17 = vector.load %arg6[%c0_14, %c0_15] : memref<256x128xbf16, #tpu.memory_space<vmem>>, vector<256x128xbf16>
      tpu.vector_store %arg6[%c0_14, %c0_15], %16 {strides = array<i32>} : memref<256x128xbf16, #tpu.memory_space<vmem>>, vector<256x128xbf16>,
    } else {
    }
    return
  }
  func.func @transform_0(%arg0: i32, %arg1: i32, %arg2: i32) -> (i32, i32) {
    %c0_i32 = arith.constant 0 : i32
    return %arg0, %arg2 : i32, i32
  }
  func.func @transform_1(%arg0: i32, %arg1: i32, %arg2: i32) -> (i32, i32) {
    %c0_i32 = arith.constant 0 : i32
    return %arg2, %arg1 : i32, i32
  }
  func.func @transform_2(%arg0: i32, %arg1: i32, %arg2: i32) -> (i32, i32) {
    %c0_i32 = arith.constant 0 : i32
    %c0_i32_0 = arith.constant 0 : i32
    return %c0_i32, %arg1 : i32, i32
  }
  func.func @transform_3(%arg0: i32, %arg1: i32, %arg2: i32) -> (i32, i32) {
    %c0_i32 = arith.constant 0 : i32
    return %arg0, %arg1 : i32, i32
  }
}

</mosaic_0001>

<bundles_post_ra>
// kernel: tpu_custom_call.1
= control target key start
LH: loop header
LB: loop body
LE: loop exit
PB: predicated region body
PF: predicated region fallthrough
CT: control target
= control target key end

     0   :  { %vm204_vm0 = vcmask 130048   ;;  %s918_s0 = inlined_call_operand.vmem [shape: bf16[256,16], index: 0, kind: input, shape index: {}]   ;;  %s919_s1 = inlined_call_operand.vmem [shape: bf16[16,128], index: 1, kind: input, shape index: {}]   ;;  %s920_s2 = inlined_call_operand.vmem [shape: f32[1,128], index: 2, kind: input, shape index: {}]   ;;  %s921_s3 = inlined_call_operand.hbm [shape: bf16[256,128], index: 3, kind: output, shape index: {}]  }
   0x1   :  { %v659_v0 = vld [vmem:[%s919_s1] sm:$0xff] }
   0x2   :  { %v643_v1 = vld [vmem:[%s918_s0] sm:$0xff]  ;;  %260 = vmatpush.bf16.msra.mxu0 %v659_v0  ;;  %755 = vmatpush.bf16.msra.mxu1 %v659_v0 }
   0x3   :  { %v647_v2 = vld [vmem:[%s918_s0 + $0x20] sm:$0xff]  ;;  %756 = vmatpush.bf16.msra.mxu2 %v659_v0  ;;  %757 = vmatpush.bf16.msra.mxu3 %v659_v0 }
   0x4   :  { %v651_v3 = vld [vmem:[%s918_s0 + $0x40] sm:$0xff] }
   0x5   :  { %v655_v4 = vld [vmem:[%s918_s0 + $0x60] sm:$0xff] }
   0x6   :  { %8 = vsyncpa [#allocation4], 0  ;;  %627 = vmatmul.msk.bf16.vlgmr.msra.gmra.mxu0 %vm204_vm0, %v643_v1  ;;  %631 = vmatmul.msk.bf16.vlgmr.msra.gmra.mxu1 %vm204_vm0, %v647_v2  ;;  %v644_v5 = vld [vmem:[%s918_s0 + $0x8] sm:$0xff]  ;;  %v645_v9 = vld [vmem:[%s918_s0 + $0x10] sm:$0xff]  ;;  %s547_s1 = sshll.u32 %s921_s3, 4  ;;  %s789_s22 = smov 64   ;;  %s548_s1 = int_to_ptr.hbm [resolvable:$true] %s547_s1 }
   0x7   :  { %635 = vmatmul.msk.bf16.vlgmr.msra.gmra.mxu2 %vm204_vm0, %v651_v3  ;;  %639 = vmatmul.msk.bf16.vlgmr.msra.gmra.mxu3 %vm204_vm0, %v655_v4  ;;  %v648_v6 = vld [vmem:[%s918_s0 + $0x28] sm:$0xff]  ;;  %v649_v10 = vld [vmem:[%s918_s0 + $0x30] sm:$0xff]  ;;  %v646_v13 = vld [vmem:[%s918_s0 + $0x18] sm:$0xff]  ;;  %s790_s23 = smov 4  }
   0x8   :  { %v652_v7 = vld [vmem:[%s918_s0 + $0x48] sm:$0xff]  ;;  %v653_v11 = vld [vmem:[%s918_s0 + $0x50] sm:$0xff]  ;;  %v650_v14 = vld [vmem:[%s918_s0 + $0x38] sm:$0xff] }
   0x9   :  { %v656_v8 = vld [vmem:[%s918_s0 + $0x68] sm:$0xff]  ;;  %v657_v12 = vld [vmem:[%s918_s0 + $0x70] sm:$0xff]  ;;  %v654_v15 = vld [vmem:[%s918_s0 + $0x58] sm:$0xff] }
   0xa   :  { %v658_v16 = vld [vmem:[%s918_s0 + $0x78] sm:$0xff]  ;;  %v881_v19 = vld [vmem:[%s920_s2] ss:$0 sm:$0xff]  ;;  %s788_s0 = smov [#allocation3]  }
   0xb   :  { %s545_s2 = sshll.u32 %s788_s0, 4  ;;  %s546_s2 = int_to_ptr.vmem [resolvable:$true] %s545_s2 }
  0x16   :  { %628 = vmatmul.msk.bf16.gmra.mxu0 %vm204_vm0, %v644_v5  ;;  %632 = vmatmul.msk.bf16.gmra.mxu1 %vm204_vm0, %v648_v6 }
  0x17   :  { %636 = vmatmul.msk.bf16.gmra.mxu2 %vm204_vm0, %v652_v7  ;;  %640 = vmatmul.msk.bf16.gmra.mxu3 %vm204_vm0, %v656_v8 }
  0x26   :  { %629 = vmatmul.msk.bf16.gmra.mxu0 %vm204_vm0, %v645_v9  ;;  %633 = vmatmul.msk.bf16.gmra.mxu1 %vm204_vm0, %v649_v10 }
  0x27   :  { %637 = vmatmul.msk.bf16.gmra.mxu2 %vm204_vm0, %v653_v11  ;;  %641 = vmatmul.msk.bf16.gmra.mxu3 %vm204_vm0, %v657_v12 }
  0x36   :  { %630 = vmatmul.msk.bf16.gmra.mxu0 %vm204_vm0, %v646_v13  ;;  %634 = vmatmul.msk.bf16.gmra.mxu1 %vm204_vm0, %v650_v14 }
  0x37   :  { %638 = vmatmul.msk.bf16.gmra.mxu2 %vm204_vm0, %v654_v15  ;;  %642 = vmatmul.msk.bf16.gmra.mxu3 %vm204_vm0, %v658_v16 }
  0x83   :  { %v262_v17 = vpop.f32.mrf.mxu0  ;;  %v282_v18 = vpop.f32.mrf.mxu1 }
  0x84   :  { %v445_v24 = vadd.f32 %v881_v19, %v262_v17  ;;  %v453_v25 = vadd.f32 %v881_v19, %v282_v18 }
  0x8a   :  { %v302_v20 = vpop.f32.mrf.mxu2  ;;  %v322_v21 = vpop.f32.mrf.mxu3 }
  0x8b   :  { %v264_v22 = vpop.f32.mrf.mxu0  ;;  %v284_v23 = vpop.f32.mrf.mxu1  ;;  %v461_v32 = vadd.f32 %v881_v19, %v302_v20  ;;  %v469_v33 = vadd.f32 %v881_v19, %v322_v21 }
  0x8c   :  { %v446_v26 = vadd.f32 %v881_v19, %v264_v22  ;;  %v454_v27 = vadd.f32 %v881_v19, %v284_v23 }
  0x8e   :  { %v663_v28 = vpack.c.bf16 %v446_v26, %v445_v24  ;;  %v683_v29 = vpack.c.bf16 %v454_v27, %v453_v25 }
  0x90   :  { %664 = vst [vmem:[#allocation3] sm:$0xff] %v663_v28  }
  0x91   :  { %743 = vst [vmem:[#allocation3 + $0x20] sm:$0xff] %v683_v29  }
  0x92   :  { %v304_v30 = vpop.f32.mrf.mxu2  ;;  %v324_v31 = vpop.f32.mrf.mxu3 }
  0x93   :  { %v462_v34 = vadd.f32 %v881_v19, %v304_v30  ;;  %v470_v35 = vadd.f32 %v881_v19, %v324_v31  ;;  %v267_v36 = vpop.f32.mrf.mxu0  ;;  %v287_v37 = vpop.f32.mrf.mxu1 }
  0x94   :  { %v447_v44 = vadd.f32 %v881_v19, %v267_v36  ;;  %v455_v45 = vadd.f32 %v881_v19, %v287_v37 }
  0x95   :  { %v703_v38 = vpack.c.bf16 %v462_v34, %v461_v32  ;;  %v723_v39 = vpack.c.bf16 %v470_v35, %v469_v33 }
  0x97   :  { %747 = vst [vmem:[#allocation3 + $0x40] sm:$0xff] %v703_v38  }
  0x98   :  { %751 = vst [vmem:[#allocation3 + $0x60] sm:$0xff] %v723_v39  }
  0x9a   :  { %v307_v40 = vpop.f32.mrf.mxu2  ;;  %v327_v41 = vpop.f32.mrf.mxu3 }
  0x9b   :  { %v269_v42 = vpop.f32.mrf.mxu0  ;;  %v289_v43 = vpop.f32.mrf.mxu1  ;;  %v463_v52 = vadd.f32 %v881_v19, %v307_v40  ;;  %v471_v53 = vadd.f32 %v881_v19, %v327_v41 }
  0x9c   :  { %v448_v46 = vadd.f32 %v881_v19, %v269_v42  ;;  %v456_v47 = vadd.f32 %v881_v19, %v289_v43 }
  0x9e   :  { %v668_v48 = vpack.c.bf16 %v448_v46, %v447_v44  ;;  %v688_v49 = vpack.c.bf16 %v456_v47, %v455_v45 }
  0xa0   :  { %740 = vst [vmem:[#allocation3 + $0x8] sm:$0xff] %v668_v48  }
  0xa1   :  { %744 = vst [vmem:[#allocation3 + $0x28] sm:$0xff] %v688_v49  }
  0xa2   :  { %v309_v50 = vpop.f32.mrf.mxu2  ;;  %v329_v51 = vpop.f32.mrf.mxu3 }
  0xa3   :  { %v464_v54 = vadd.f32 %v881_v19, %v309_v50  ;;  %v472_v55 = vadd.f32 %v881_v19, %v329_v51  ;;  %v272_v56 = vpop.f32.mrf.mxu0  ;;  %v292_v57 = vpop.f32.mrf.mxu1 }
  0xa4   :  { %v449_v0 = vadd.f32 %v881_v19, %v272_v56  ;;  %v457_v1 = vadd.f32 %v881_v19, %v292_v57 }
  0xa5   :  { %v708_v58 = vpack.c.bf16 %v464_v54, %v463_v52  ;;  %v728_v59 = vpack.c.bf16 %v472_v55, %v471_v53 }
  0xa7   :  { %748 = vst [vmem:[#allocation3 + $0x48] sm:$0xff] %v708_v58  }
  0xa8   :  { %752 = vst [vmem:[#allocation3 + $0x68] sm:$0xff] %v728_v59  }
  0xaa   :  { %v312_v60 = vpop.f32.mrf.mxu2  ;;  %v332_v61 = vpop.f32.mrf.mxu3 }
  0xab   :  { %v274_v62 = vpop.f32.mrf.mxu0  ;;  %v294_v63 = vpop.f32.mrf.mxu1  ;;  %v465_v8 = vadd.f32 %v881_v19, %v312_v60  ;;  %v473_v9 = vadd.f32 %v881_v19, %v332_v61 }
  0xac   :  { %v450_v2 = vadd.f32 %v881_v19, %v274_v62  ;;  %v458_v3 = vadd.f32 %v881_v19, %v294_v63 }
  0xae   :  { %v673_v4 = vpack.c.bf16 %v450_v2, %v449_v0  ;;  %v693_v5 = vpack.c.bf16 %v458_v3, %v457_v1 }
  0xb0   :  { %741 = vst [vmem:[#allocation3 + $0x10] sm:$0xff] %v673_v4  }
  0xb1   :  { %745 = vst [vmem:[#allocation3 + $0x30] sm:$0xff] %v693_v5  }
  0xb2   :  { %v314_v6 = vpop.f32.mrf.mxu2  ;;  %v334_v7 = vpop.f32.mrf.mxu3 }
  0xb3   :  { %v466_v10 = vadd.f32 %v881_v19, %v314_v6  ;;  %v474_v11 = vadd.f32 %v881_v19, %v334_v7  ;;  %v277_v12 = vpop.f32.mrf.mxu0  ;;  %v297_v13 = vpop.f32.mrf.mxu1 }
  0xb4   :  { %v451_v21 = vadd.f32 %v881_v19, %v277_v12  ;;  %v459_v22 = vadd.f32 %v881_v19, %v297_v13 }
  0xb5   :  { %v713_v14 = vpack.c.bf16 %v466_v10, %v465_v8  ;;  %v733_v15 = vpack.c.bf16 %v474_v11, %v473_v9 }
  0xb7   :  { %749 = vst [vmem:[#allocation3 + $0x50] sm:$0xff] %v713_v14  }
  0xb8   :  { %753 = vst [vmem:[#allocation3 + $0x70] sm:$0xff] %v733_v15  }
  0xba   :  { %v317_v16 = vpop.f32.mrf.mxu2  ;;  %v337_v17 = vpop.f32.mrf.mxu3 }
  0xbb   :  { %v279_v18 = vpop.f32.mrf.mxu0  ;;  %v299_v20 = vpop.f32.mrf.mxu1  ;;  %v467_v29 = vadd.f32 %v881_v19, %v317_v16  ;;  %v475_v30 = vadd.f32 %v881_v19, %v337_v17 }
  0xbc   :  { %v452_v23 = vadd.f32 %v881_v19, %v279_v18  ;;  %v460_v24 = vadd.f32 %v881_v19, %v299_v20 }
  0xbe   :  { %v678_v25 = vpack.c.bf16 %v452_v23, %v451_v21  ;;  %v698_v26 = vpack.c.bf16 %v460_v24, %v459_v22 }
  0xc0   :  { %742 = vst [vmem:[#allocation3 + $0x18] sm:$0xff] %v678_v25  }
  0xc1   :  { %746 = vst [vmem:[#allocation3 + $0x38] sm:$0xff] %v698_v26  }
  0xc2   :  { %v319_v27 = vpop.f32.mrf.mxu2  ;;  %v339_v28 = vpop.f32.mrf.mxu3 }
  0xc3   :  { %v468_v31 = vadd.f32 %v881_v19, %v319_v27  ;;  %v476_v32 = vadd.f32 %v881_v19, %v339_v28 }
  0xc5   :  { %v718_v33 = vpack.c.bf16 %v468_v31, %v467_v29  ;;  %v738_v34 = vpack.c.bf16 %v476_v32, %v475_v30 }
  0xc7   :  { %750 = vst [vmem:[#allocation3 + $0x58] sm:$0xff] %v718_v33  }
  0xc8   :  { %754 = vst [vmem:[#allocation3 + $0x78] sm:$0xff] %v738_v34  }
  0xc9   :  { %553 = dma.vmem_to_hbm [thread:$0]  %s546_s2, 2048, %s548_s1, [#allocation4], %s789_s22, %s789_s22, %s790_s23  }
  0xca   :  { %786 = dma.done.wait [#allocation4], 2048  }
  0xcb   :  { %787 = vsyncadd [#allocation4], 4294965248 }
  0xcc   :  { %558 = vsyncpa [#allocation4], 1 }

</bundles_post_ra>
